<compile_context>
chip_gen: v5e
topology: v5e:2x2
jax: 0.10.0
libtpu: 0.0.40
codegen_flags: <defaults>
</compile_context>

<pallas_src>
import jax
import jax.numpy as jnp
from jax.experimental import pallas as pl
from jax.experimental.pallas import tpu as pltpu


def _choose_tb(batch_size, flat_width, dtype_bytes,
               target_block_bytes, split_threshold_bytes):
    """Pick the per-step batch tile TB.

    * If the whole output is small (<= split_threshold_bytes), use one
      full-extent block: a single grid step avoids ~0.35 us/step pipeline
      overhead on sub-microsecond copies.
    * Otherwise aim for ~target_block_bytes per block (a single scratch
      buffer - no output double-buffering in the fill-once scheme), rounded
      to the packed sublane tile for the dtype.
    """
    total_bytes = batch_size * flat_width * dtype_bytes
    if total_bytes <= split_threshold_bytes:
        return batch_size

    row_bytes = max(1, flat_width * dtype_bytes)
    tb = max(1, target_block_bytes // row_bytes)
    if tb >= batch_size:
        return batch_size

    # dtype-aware sublane tile: 8 rows for 4-byte, 16 for 2-byte, 32 for 1-byte.
    sub = 8 * max(1, 4 // dtype_bytes)
    tb = max(sub, (tb // sub) * sub)
    if tb >= batch_size:
        return batch_size
    return tb


def _make_expand_kernel(batch_size, tb, num_steps, nslots):
    """Fill a (tb, PD) VMEM scratch once, then DMA it to every batch slab."""

    def kernel(w_ref, o_hbm, fill_ref, sem):
        # w_ref:    (1, PD)  flattened prompt weight (VMEM, resident)
        # o_hbm:    (B, PD)  output, left in HBM (memory_space=pl.ANY)
        # fill_ref: (tb, PD) VMEM scratch holding tb identical rows
        # sem:      (nslots,) DMA semaphores (up to nslots outstanding DMAs)
        b = pl.program_id(0)

        # Fill the scratch exactly once.  Grid axis is "arbitrary" ->
        # sequential on one core, so step 0 always runs first on this core.
        @pl.when(b == 0)
        def _():
            fill_ref[...] = jnp.broadcast_to(w_ref[...], fill_ref.shape)

        slot = b % nslots

        # Before reusing a semaphore slot, retire the DMA issued `nslots`
        # steps earlier (same transfer size, so a same-shaped dummy slice is
        # a valid wait descriptor).
        if num_steps > nslots:
            @pl.when(b >= nslots)
            def _():
                pltpu.make_async_copy(
                    fill_ref, o_hbm.at[pl.ds(0, tb), :], sem.at[slot]).wait()

        # Clamp the start so the last (possibly partial) tile overlaps the
        # previous one instead of running past the end; all rows are
        # identical, so overlapping writes are harmless and every DMA keeps
        # the full (tb, PD) shape.
        start = jnp.minimum(b * tb, batch_size - tb)
        pltpu.make_async_copy(
            fill_ref, o_hbm.at[pl.ds(start, tb), :], sem.at[slot]).start()

        # Drain every outstanding DMA on the final step.
        @pl.when(b == num_steps - 1)
        def _():
            for s in range(min(num_steps, nslots)):
                pltpu.make_async_copy(
                    fill_ref, o_hbm.at[pl.ds(0, tb), :], sem.at[s]).wait()

    return kernel


def prefix_one_expand(weight, batch_size, *, materialize=True,
                      target_block_bytes=8 * 1024 * 1024,
                      split_threshold_bytes=4 * 1024 * 1024,
                      max_outstanding_dmas=4):
    """Pallas equivalent of `p.weight.expand(batch_size, -1, -1)`."""
    P, D = weight.shape
    if not materialize:
        # Best option when the consumer can fuse: zero HBM traffic.
        return jnp.broadcast_to(weight, (batch_size, P, D))

    PD = P * D
    itemsize = jnp.dtype(weight.dtype).itemsize
    w_flat = weight.reshape(1, PD)

    tb = _choose_tb(batch_size, PD, itemsize,
                    target_block_bytes, split_threshold_bytes)
    num_steps = pl.cdiv(batch_size, tb)
    nslots = max(1, min(max_outstanding_dmas, num_steps))

    # VMEM footprint: one fill scratch + (double-buffered) weight block + slack.
    needed = tb * PD * itemsize + 2 * PD * itemsize
    vmem_limit = int(min(96 * 1024 * 1024,
                         max(needed + 8 * 1024 * 1024, 16 * 1024 * 1024)))

    out_flat = pl.pallas_call(
        _make_expand_kernel(batch_size, tb, num_steps, nslots),
        out_shape=jax.ShapeDtypeStruct((batch_size, PD), weight.dtype),
        grid_spec=pltpu.PrefetchScalarGridSpec(
            num_scalar_prefetch=0,
            grid=(num_steps,),
            in_specs=[
                # full flattened weight, same block every step -> stays resident
                pl.BlockSpec((1, PD), lambda b: (0, 0)),
            ],
            # output stays in HBM; we write it with manual DMAs
            out_specs=pl.BlockSpec(memory_space=pl.ANY),
            scratch_shapes=[
                pltpu.VMEM((tb, PD), weight.dtype),
                pltpu.SemaphoreType.DMA((nslots,)),
            ],
        ),
        compiler_params=pltpu.CompilerParams(
            # "arbitrary": the fill-once scratch is grid-carried state; the
            # DMA engines (not TC slots) do the copying, so one core with a
            # deep DMA queue already saturates the HBM write path.
            dimension_semantics=("arbitrary",),
            vmem_limit_bytes=vmem_limit,
        ),
        cost_estimate=pl.CostEstimate(
            flops=0,
            transcendentals=0,
            bytes_accessed=(batch_size * PD + PD) * itemsize,
        ),
    )(w_flat)

    return out_flat.reshape(batch_size, P, D)


class PrefixOne:
    """JAX port of the PyTorch PrefixOne module (deterministic init)."""

    def __init__(self, emb_d, e_p_length, e_layers, key=None):
        self.emb_d = emb_d
        self.e_p_length = e_p_length
        self.e_layers = list(e_layers)
        if key is None:
            key = jax.random.PRNGKey(0)
        self.params = {}
        for e in self.e_layers:
            key, sub = jax.random.split(key)
            # nn.Linear(emb_d, e_p_length, bias=False).weight -> (e_p_length, emb_d)
            # Same uniform bound as torch (1/sqrt(fan_in)), different RNG stream.
            bound = 1.0 / (emb_d ** 0.5)
            w = jax.random.uniform(
                sub, (e_p_length, emb_d), minval=-bound, maxval=bound,
                dtype=jnp.float32)
            self.params[f"e_p_{e}"] = w

    def forward(self, l, batch_size):
        p_return = None
        if l in self.e_layers:
            w = self.params[f"e_p_{l}"]
            p_return = prefix_one_expand(w, batch_size)
        return p_return

    __call__ = forward


if __name__ == "__main__":
    emb_d = 32
    e_p_length = 8
    e_layers = [0, 1, 2]
    batch_size = 2

    module = PrefixOne(emb_d, e_p_length, e_layers, key=jax.random.PRNGKey(0))

    # Layer in e_layers -> expanded prompt (single-block fast path).
    out = module(1, batch_size)
    out = jax.block_until_ready(out)
    assert out.shape == (batch_size, e_p_length, emb_d)
    ref = jnp.broadcast_to(module.params["e_p_1"],
                           (batch_size, e_p_length, emb_d))
    assert jnp.allclose(out, ref), "kernel output mismatch"

    # Larger batch, still below the split threshold -> one grid step.
    out_big = jax.block_until_ready(module(2, 20))
    ref_big = jnp.broadcast_to(module.params["e_p_2"],
                               (20, e_p_length, emb_d))
    assert out_big.shape == (20, e_p_length, emb_d)
    assert jnp.allclose(out_big, ref_big), "batched kernel output mismatch"

    # Force the multi-step manual-DMA path (small shapes, tiny forced tile):
    # B=37, tb=8 -> 5 grid steps, semaphore-slot reuse, clamped partial tile.
    w0 = module.params["e_p_0"]
    out_multi = prefix_one_expand(
        w0, 37,
        target_block_bytes=8 * e_p_length * emb_d * 4,
        split_threshold_bytes=0)
    out_multi = jax.block_until_ready(out_multi)
    ref_multi = jnp.broadcast_to(w0, (37, e_p_length, emb_d))
    assert out_multi.shape == (37, e_p_length, emb_d)
    assert jnp.allclose(out_multi, ref_multi), "multi-step kernel mismatch"

    # Layer not in e_layers -> None (matches PyTorch forward).
    assert module(99, batch_size) is None

    print("KERNEL_OK")
</pallas_src>

<mosaic_0001>
module attributes {stable_mosaic.version = 11 : i64} {
  func.func @kernel(%arg0: i32, %arg1: memref<1x256xf32, #tpu.memory_space<vmem>>, %arg2: memref<2x256xf32, #tpu.memory_space<any>>, %arg3: memref<2x256xf32, #tpu.memory_space<vmem>>, %arg4: memref<1x!tpu.dma_semaphore, #tpu.memory_space<semaphore_mem>>) attributes {dimension_semantics = [#tpu.dimension_semantics<arbitrary>], iteration_bounds = array<i64: 1>, scalar_prefetch = 0 : i64, scratch_operands = 2 : i64, tpu.core_type = #tpu.core_type<tc>, window_params = [{pipeline_mode = #tpu.pipeline_mode<synchronous>, transform_indices = @transform_0, window_bounds = array<i64: 1, 256>}, {}]} {
    %c0_i32 = arith.constant 0 : i32
    %0 = arith.cmpi eq, %arg0, %c0_i32 : i32
    %1 = arith.extui %0 : i1 to i32
    %c0_i32_0 = arith.constant 0 : i32
    %2 = arith.cmpi ne, %1, %c0_i32_0 : i32
    scf.if %2 {
      %c0 = arith.constant 0 : index
      %c0_10 = arith.constant 0 : index
      %21 = vector.load %arg1[%c0, %c0_10] : memref<1x256xf32, #tpu.memory_space<vmem>>, vector<1x256xf32>
      %22 = vector.shape_cast %21 : vector<1x256xf32> to vector<1x256xf32>
      %23 = vector.broadcast %22 : vector<1x256xf32> to vector<2x256xf32>
      %c0_11 = arith.constant 0 : index
      %c0_12 = arith.constant 0 : index
      %24 = vector.load %arg3[%c0_11, %c0_12] : memref<2x256xf32, #tpu.memory_space<vmem>>, vector<2x256xf32>
      tpu.vector_store %arg3[%c0_11, %c0_12], %23 {strides = array<i32>} : memref<2x256xf32, #tpu.memory_space<vmem>>, vector<2x256xf32>,
    } else {
    }
    %c1_i32 = arith.constant 1 : i32
    %c0_i32_1 = arith.constant 0 : i32
    %3 = arith.cmpi eq, %c1_i32, %c0_i32_1 : i32
    %c1_i32_2 = arith.constant 1 : i32
    %4 = arith.select %3, %c1_i32_2, %c1_i32 : i32
    %5 = arith.remsi %arg0, %4 : i32
    %c0_i32_3 = arith.constant 0 : i32
    %6 = arith.cmpi ne, %5, %c0_i32_3 : i32
    %c0_i32_4 = arith.constant 0 : i32
    %7 = arith.cmpi slt, %5, %c0_i32_4 : i32
    %c0_i32_5 = arith.constant 0 : i32
    %8 = arith.cmpi slt, %4, %c0_i32_5 : i32
    %9 = arith.xori %7, %8 : i1
    %10 = arith.andi %9, %6 : i1
    %11 = arith.addi %5, %4 : i32
    %12 = arith.select %10, %11, %5 : i32
    %c2_i32 = arith.constant 2 : i32
    %13 = arith.muli %arg0, %c2_i32 : i32
    %c0_i32_6 = arith.constant 0 : i32
    %14 = arith.minsi %13, %c0_i32_6 : i32
    %c0_i32_7 = arith.constant 0 : i32
    %15 = tpu.memref_slice %arg2[%14, %c0_i32_7] : memref<2x256xf32, #tpu.memory_space<any>> -> memref<2x256xf32, #tpu.memory_space<any>>
    %16 = tpu.memref_slice %arg4[%12] : memref<1x!tpu.dma_semaphore, #tpu.memory_space<semaphore_mem>> -> memref<1x!tpu.dma_semaphore, #tpu.memory_space<semaphore_mem>>
    %17 = tpu.memref_squeeze %16 : memref<1x!tpu.dma_semaphore, #tpu.memory_space<semaphore_mem>> -> memref<!tpu.dma_semaphore, #tpu.memory_space<semaphore_mem>>
    tpu.enqueue_dma source(%arg3 : memref<2x256xf32, #tpu.memory_space<vmem>>) target(%15 : memref<2x256xf32, #tpu.memory_space<any>>) target_semaphore(%17 : memref<!tpu.dma_semaphore, #tpu.memory_space<semaphore_mem>>)
    %c0_i32_8 = arith.constant 0 : i32
    %18 = arith.cmpi eq, %arg0, %c0_i32_8 : i32
    %19 = arith.extui %18 : i1 to i32
    %c0_i32_9 = arith.constant 0 : i32
    %20 = arith.cmpi ne, %19, %c0_i32_9 : i32
    scf.if %20 {
      %c0_i32_10 = arith.constant 0 : i32
      %c0_i32_11 = arith.constant 0 : i32
      %c0_i32_12 = arith.constant 0 : i32
      %21 = tpu.memref_slice %arg2[%c0_i32_11, %c0_i32_12] : memref<2x256xf32, #tpu.memory_space<any>> -> memref<2x256xf32, #tpu.memory_space<any>>
      %22 = tpu.memref_slice %arg4[%c0_i32_10] : memref<1x!tpu.dma_semaphore, #tpu.memory_space<semaphore_mem>> -> memref<1x!tpu.dma_semaphore, #tpu.memory_space<semaphore_mem>>
      %23 = tpu.memref_squeeze %22 : memref<1x!tpu.dma_semaphore, #tpu.memory_space<semaphore_mem>> -> memref<!tpu.dma_semaphore, #tpu.memory_space<semaphore_mem>>
      tpu.wait_dma2 semaphore(%23 : memref<!tpu.dma_semaphore, #tpu.memory_space<semaphore_mem>>) src(%arg3 : memref<2x256xf32, #tpu.memory_space<vmem>>) dst(%21 : memref<2x256xf32, #tpu.memory_space<any>>)
    } else {
    }
    return
  }
  func.func @transform_0(%arg0: i32) -> (i32, i32) {
    %c0_i32 = arith.constant 0 : i32
    %c0_i32_0 = arith.constant 0 : i32
    %c0_i32_1 = arith.constant 0 : i32
    return %c0_i32, %c0_i32_0 : i32, i32
  }
}

</mosaic_0001>

<bundles_post_ra>
// kernel: tpu_custom_call.1
= control target key start
LH: loop header
LB: loop body
LE: loop exit
PB: predicated region body
PF: predicated region fallthrough
CT: control target
= control target key end

     0   :  { %6 = vsyncpa [#allocation5], 0  ;;  %s127_s9 = smov [#allocation4]   ;;  %s145_s0 = inlined_call_operand.hbm [shape: f32[1,256], index: 0, kind: input, shape index: {}]   ;;  %s146_s1 = inlined_call_operand.hbm [shape: f32[2,256], index: 1, kind: output, shape index: {}]  }
   0x1   :  { %s12_s8 = sshll.u32 %s145_s0, 4  ;;  %s14_s10 = sshll.u32 %s127_s9, 4  ;;  %s13_s8 = int_to_ptr.hbm [resolvable:$true] %s12_s8  ;;  %s15_s10 = int_to_ptr.vmem [resolvable:$true] %s14_s10 }
   0x2   :  { %17 = dma.hbm_to_vmem [thread:$0]  %s13_s8, 32, %s15_s10, [#allocation5]  }
   0x3   :  { %123 = dma.done.wait [#allocation5], 32  }
   0x4   :  { %124 = vsyncadd [#allocation5], 4294967264  ;;  %v26_v0 = vld [vmem:[#allocation4] sm:$0x3]  ;;  %s128_s11 = smov [#allocation2]   ;;  %s52_s15 = sshll.u32 %s146_s1, 4  ;;  %s53_s15 = int_to_ptr.hbm [resolvable:$true] %s52_s15 }
   0x5   :  { %v28_v1 = vperm.slane %v26_v0, 0  ;;  %v29_v2 = vperm.slane %v26_v0, 1  ;;  %s50_s12 = sshll.u32 %s128_s11, 4  ;;  %vm31_vm0 = vcmask 1041408   ;;  %s51_s12 = int_to_ptr.vmem [resolvable:$true] %s50_s12 }
   0x7   :  { %v30_v3 = vrot.slane %v29_v2, 6 }
   0x9   :  { %v32_v4 = vsel %vm31_vm0, %v28_v1, %v30_v3 }
   0xa   :  { %34 = vst [vmem:[#allocation2] sm:$0xf] %v32_v4 }
   0xb   :  { %55 = dma.vmem_to_hbm [thread:$0]  %s51_s12, 64, %s53_s15, [#allocation3] }
   0xc   :  { %125 = dma.done.wait [#allocation3], 64 }
   0xd   :  { %126 = vsyncadd [#allocation3], 4294967232 }
   0xe   :  { %63 = vsyncpa [#allocation5], 1 }
   0xf   :  { %64 = vsyncmov [#allocation3] }
  0x12   :  { %s65_s0 = vpop.sfrf %64 }
  0x13   :  { %p72_p0 = scmp.ne.s32.totalorder %s65_s0, 0 }
  0x15   :  { %69 = shalt.err (%p72_p0)  }

</bundles_post_ra>
